<compile_context>
chip_gen: v6e
topology: v6e:2x2x1
jax: 0.10.0
libtpu: 0.0.40
codegen_flags: <defaults>
</compile_context>

<pallas_src>
import jax
import jax.numpy as jnp
from jax.experimental import pallas as pl
from jax.experimental.pallas import tpu as pltpu  # noqa: F401 (kept for TPU params if needed)

BN_EPS = 1e-5


# ----------------------------- fused kernel --------------------------------


def _make_generator_kernel(n_res):
    """Build the fused kernel for `n_res` Residual blocks + final Linear.

    Ref order:
      x,
      for each residual block k: (k+1) weight segments, gamma, beta,
      for the final linear:      (n_res+1) weight segments, bias,
      out_ref.
    Weight segments for a block follow the activation order
    [act_{k-1}, ..., act_0, x] (== the torch.cat([out, input]) layout).
    """

    def kernel(*refs):
        it = iter(refs)
        x_f32 = next(it)[...]                         # (B, e) f32
        # Activations kept as bf16 MXU operands; accumulation is f32.
        acts = [x_f32.astype(jnp.bfloat16)]

        for k in range(n_res):
            w_refs = [next(it) for _ in range(k + 1)]
            gamma = next(it)[...]                     # (1, o) f32
            beta = next(it)[...]                      # (1, o) f32

            # Split-weight matmul == matmul of the concatenated activations
            # (concat eliminated entirely).  Linear bias omitted: it cancels
            # against the BN mean subtraction.
            h = jnp.dot(acts[0], w_refs[0][...],
                        preferred_element_type=jnp.float32)
            for a, w_ref in zip(acts[1:], w_refs[1:]):
                h = h + jnp.dot(a, w_ref[...],
                                preferred_element_type=jnp.float32)

            # BatchNorm1d (training mode): batch mean, biased variance,
            # eps=1e-5, affine — folded into one scale/shift, then ReLU.
            mean = jnp.mean(h, axis=0, keepdims=True)
            var = jnp.mean((h - mean) ** 2, axis=0, keepdims=True)
            scale = gamma * jax.lax.rsqrt(var + BN_EPS)
            shift = beta - mean * scale
            act = jnp.maximum(h * scale + shift, 0.0)

            acts = [act.astype(jnp.bfloat16)] + acts  # "concat" order

        # Final Linear over [act_{n-1}, ..., act_0, x], bias kept.
        w_refs = [next(it) for _ in range(n_res + 1)]
        b = next(it)[...]                             # (1, data_dim) f32
        out_ref = next(it)

        out = jnp.dot(acts[0], w_refs[0][...],
                      preferred_element_type=jnp.float32)
        for a, w_ref in zip(acts[1:], w_refs[1:]):
            out = out + jnp.dot(a, w_ref[...],
                                preferred_element_type=jnp.float32)
        out_ref[...] = (out + b).astype(out_ref.dtype)

    return kernel


# ----------------------------- wrapper --------------------------------------


def _full_spec(shape):
    # Whole-array block (no grid), resident in VMEM for the whole kernel.
    return pl.BlockSpec(shape, lambda: (0,) * len(shape))


def generator_forward(x, params):
    """Run the whole Generator forward pass as a single Pallas kernel."""
    B, e = x.shape
    n_res = sum(1 for p in params if p[0] == "residual")

    kernel_inputs = [x]
    in_specs = [_full_spec(x.shape)]
    seg_dims = [e]          # feature-segment sizes of the current "concat"
    data_dim = None

    def add_weight_segments(w):
        # Split the (in, out) weight along its input axis to match the
        # activation segments [act_{k-1}, ..., act_0, x]; cast to bf16 for
        # the MXU (f32 accumulation happens inside the kernel).
        offs = 0
        for d in seg_dims:
            seg = w[offs:offs + d, :].astype(jnp.bfloat16)
            kernel_inputs.append(seg)
            in_specs.append(_full_spec(seg.shape))
            offs += d

    for p in params:
        if p[0] == "residual":
            _, w, _b_unused, gamma, beta = p   # fc bias dropped: cancels in BN
            add_weight_segments(w)
            kernel_inputs += [gamma, beta]
            in_specs += [_full_spec(gamma.shape), _full_spec(beta.shape)]
            seg_dims = [w.shape[1]] + seg_dims
        else:
            _, w, b = p
            add_weight_segments(w)
            kernel_inputs.append(b)
            in_specs.append(_full_spec(b.shape))
            data_dim = w.shape[1]

    return pl.pallas_call(
        _make_generator_kernel(n_res),
        out_shape=jax.ShapeDtypeStruct((B, data_dim), jnp.float32),
        in_specs=in_specs,
        out_specs=_full_spec((B, data_dim)),
    )(*kernel_inputs)


# ----------------------------- params & reference ---------------------------


def init_generator_params(key, embedding_dim, generator_dim, data_dim):
    """Deterministic synthetic parameters matching the PyTorch module shapes."""
    params = []
    dim = embedding_dim
    for o in generator_dim:
        key, k_w, k_b = jax.random.split(key, 3)
        w = jax.random.normal(k_w, (dim, o), jnp.float32) * 0.05    # (in, out)
        b = jax.random.normal(k_b, (1, o), jnp.float32) * 0.05      # unused in kernel
        gamma = jnp.ones((1, o), jnp.float32)                       # BN weight
        beta = jnp.zeros((1, o), jnp.float32)                       # BN bias
        params.append(("residual", w, b, gamma, beta))
        dim += o
    key, k_w, k_b = jax.random.split(key, 3)
    w = jax.random.normal(k_w, (dim, data_dim), jnp.float32) * 0.05
    b = jax.random.normal(k_b, (1, data_dim), jnp.float32) * 0.05
    params.append(("linear", w, b))
    return params


def generator_reference(x, params):
    """Pure-JAX f32 reference mirroring the PyTorch module exactly."""
    for p in params:
        if p[0] == "residual":
            _, w, b, gamma, beta = p
            h = x @ w + b
            mean = jnp.mean(h, axis=0, keepdims=True)
            var = jnp.mean((h - mean) ** 2, axis=0, keepdims=True)
            hn = (h - mean) * jax.lax.rsqrt(var + BN_EPS)
            act = jnp.maximum(gamma * hn + beta, 0.0)
            x = jnp.concatenate([act, x], axis=1)
        else:
            _, w, b = p
            x = x @ w + b
    return x


# ----------------------------- main ----------------------------------------

if __name__ == "__main__":
    # Lane-dense, sublane-filled shapes (multiples of 128 / 8): small but
    # realistic GAN sampling config so stores are unmasked and MXU tiles full.
    batch = 128
    embedding_dim = 128
    generator_dim = (128, 128)
    data_dim = 128

    key = jax.random.PRNGKey(0)
    key, k_in = jax.random.split(key)
    x = jax.random.normal(k_in, (batch, embedding_dim), jnp.float32)
    params = init_generator_params(key, embedding_dim, generator_dim, data_dim)

    out = jax.block_until_ready(generator_forward(x, params))

    assert out.shape == (batch, data_dim), out.shape
    assert out.dtype == jnp.float32
    assert bool(jnp.all(jnp.isfinite(out)))

    # Sanity vs. an f32 reference (bf16 MXU operands -> loose tolerance).
    ref = generator_reference(x, params)
    max_err = float(jnp.max(jnp.abs(out - ref)))
    assert max_err < 0.1, f"max abs error {max_err}"

    print("KERNEL_OK")
</pallas_src>

<mosaic_0001>
module attributes {stable_mosaic.version = 11 : i64} {
  func.func @kernel(%arg0: memref<128x128xf32, #tpu.memory_space<vmem>>, %arg1: memref<128x128xbf16, #tpu.memory_space<vmem>>, %arg2: memref<1x128xf32, #tpu.memory_space<vmem>>, %arg3: memref<1x128xf32, #tpu.memory_space<vmem>>, %arg4: memref<128x128xbf16, #tpu.memory_space<vmem>>, %arg5: memref<128x128xbf16, #tpu.memory_space<vmem>>, %arg6: memref<1x128xf32, #tpu.memory_space<vmem>>, %arg7: memref<1x128xf32, #tpu.memory_space<vmem>>, %arg8: memref<128x128xbf16, #tpu.memory_space<vmem>>, %arg9: memref<128x128xbf16, #tpu.memory_space<vmem>>, %arg10: memref<128x128xbf16, #tpu.memory_space<vmem>>, %arg11: memref<1x128xf32, #tpu.memory_space<vmem>>, %arg12: memref<128x128xf32, #tpu.memory_space<vmem>>) attributes {dimension_semantics = [], scalar_prefetch = 0 : i64, scratch_operands = 0 : i64, tpu.core_type = #tpu.core_type<tc>} {
    %c0 = arith.constant 0 : index
    %c0_0 = arith.constant 0 : index
    %0 = vector.load %arg0[%c0, %c0_0] : memref<128x128xf32, #tpu.memory_space<vmem>>, vector<128x128xf32>
    %1 = arith.truncf %0 : vector<128x128xf32> to vector<128x128xbf16>
    %c0_1 = arith.constant 0 : index
    %c0_2 = arith.constant 0 : index
    %2 = vector.load %arg2[%c0_1, %c0_2] : memref<1x128xf32, #tpu.memory_space<vmem>>, vector<1x128xf32>
    %c0_3 = arith.constant 0 : index
    %c0_4 = arith.constant 0 : index
    %3 = vector.load %arg3[%c0_3, %c0_4] : memref<1x128xf32, #tpu.memory_space<vmem>>, vector<1x128xf32>
    %c0_5 = arith.constant 0 : index
    %c0_6 = arith.constant 0 : index
    %4 = vector.load %arg1[%c0_5, %c0_6] : memref<128x128xbf16, #tpu.memory_space<vmem>>, vector<128x128xbf16>
    %cst = arith.constant dense<0.000000e+00> : vector<128x128xf32>
    %5 = tpu.matmul %1, %4, %cst {dimension_numbers = #tpu.dot_dimension_numbers<[1], [0], [0], [1], [0, 0, 1, 1], [], []>} : vector<128x128xbf16>, vector<128x128xbf16>, vector<128x128xf32> -> vector<128x128xf32>
    %cst_7 = arith.constant dense<0.000000e+00> : vector<128xf32>
    %6 = vector.multi_reduction <add>, %5, %cst_7 [0] : vector<128x128xf32> to vector<128xf32>
    %7 = vector.shape_cast %6 : vector<128xf32> to vector<1x128xf32>
    %cst_8 = arith.constant 1.280000e+02 : f32
    %8 = vector.broadcast %cst_8 : f32 to vector<1x128xf32>
    %9 = arith.divf %7, %8 : vector<1x128xf32>
    %10 = vector.broadcast %9 : vector<1x128xf32> to vector<128x128xf32>
    %11 = arith.subf %5, %10 : vector<128x128xf32>
    %12 = arith.mulf %11, %11 : vector<128x128xf32>
    %cst_9 = arith.constant dense<0.000000e+00> : vector<128xf32>
    %13 = vector.multi_reduction <add>, %12, %cst_9 [0] : vector<128x128xf32> to vector<128xf32>
    %14 = vector.shape_cast %13 : vector<128xf32> to vector<1x128xf32>
    %cst_10 = arith.constant 1.280000e+02 : f32
    %15 = vector.broadcast %cst_10 : f32 to vector<1x128xf32>
    %16 = arith.divf %14, %15 : vector<1x128xf32>
    %cst_11 = arith.constant 9.99999974E-6 : f32
    %17 = vector.broadcast %cst_11 : f32 to vector<1x128xf32>
    %18 = arith.addf %16, %17 : vector<1x128xf32>
    %19 = math.rsqrt %18 : vector<1x128xf32>
    %20 = arith.mulf %2, %19 : vector<1x128xf32>
    %21 = arith.mulf %9, %20 : vector<1x128xf32>
    %22 = arith.subf %3, %21 : vector<1x128xf32>
    %23 = vector.broadcast %20 : vector<1x128xf32> to vector<128x128xf32>
    %24 = arith.mulf %5, %23 : vector<128x128xf32>
    %25 = vector.broadcast %22 : vector<1x128xf32> to vector<128x128xf32>
    %26 = arith.addf %24, %25 : vector<128x128xf32>
    %cst_12 = arith.constant 0.000000e+00 : f32
    %27 = vector.broadcast %cst_12 : f32 to vector<128x128xf32>
    %28 = arith.maximumf %26, %27 : vector<128x128xf32>
    %29 = arith.truncf %28 : vector<128x128xf32> to vector<128x128xbf16>
    %c0_13 = arith.constant 0 : index
    %c0_14 = arith.constant 0 : index
    %30 = vector.load %arg6[%c0_13, %c0_14] : memref<1x128xf32, #tpu.memory_space<vmem>>, vector<1x128xf32>
    %c0_15 = arith.constant 0 : index
    %c0_16 = arith.constant 0 : index
    %31 = vector.load %arg7[%c0_15, %c0_16] : memref<1x128xf32, #tpu.memory_space<vmem>>, vector<1x128xf32>
    %c0_17 = arith.constant 0 : index
    %c0_18 = arith.constant 0 : index
    %32 = vector.load %arg4[%c0_17, %c0_18] : memref<128x128xbf16, #tpu.memory_space<vmem>>, vector<128x128xbf16>
    %cst_19 = arith.constant dense<0.000000e+00> : vector<128x128xf32>
    %33 = tpu.matmul %29, %32, %cst_19 {dimension_numbers = #tpu.dot_dimension_numbers<[1], [0], [0], [1], [0, 0, 1, 1], [], []>} : vector<128x128xbf16>, vector<128x128xbf16>, vector<128x128xf32> -> vector<128x128xf32>
    %c0_20 = arith.constant 0 : index
    %c0_21 = arith.constant 0 : index
    %34 = vector.load %arg5[%c0_20, %c0_21] : memref<128x128xbf16, #tpu.memory_space<vmem>>, vector<128x128xbf16>
    %cst_22 = arith.constant dense<0.000000e+00> : vector<128x128xf32>
    %35 = tpu.matmul %1, %34, %cst_22 {dimension_numbers = #tpu.dot_dimension_numbers<[1], [0], [0], [1], [0, 0, 1, 1], [], []>} : vector<128x128xbf16>, vector<128x128xbf16>, vector<128x128xf32> -> vector<128x128xf32>
    %36 = arith.addf %33, %35 : vector<128x128xf32>
    %cst_23 = arith.constant dense<0.000000e+00> : vector<128xf32>
    %37 = vector.multi_reduction <add>, %36, %cst_23 [0] : vector<128x128xf32> to vector<128xf32>
    %38 = vector.shape_cast %37 : vector<128xf32> to vector<1x128xf32>
    %cst_24 = arith.constant 1.280000e+02 : f32
    %39 = vector.broadcast %cst_24 : f32 to vector<1x128xf32>
    %40 = arith.divf %38, %39 : vector<1x128xf32>
    %41 = vector.broadcast %40 : vector<1x128xf32> to vector<128x128xf32>
    %42 = arith.subf %36, %41 : vector<128x128xf32>
    %43 = arith.mulf %42, %42 : vector<128x128xf32>
    %cst_25 = arith.constant dense<0.000000e+00> : vector<128xf32>
    %44 = vector.multi_reduction <add>, %43, %cst_25 [0] : vector<128x128xf32> to vector<128xf32>
    %45 = vector.shape_cast %44 : vector<128xf32> to vector<1x128xf32>
    %cst_26 = arith.constant 1.280000e+02 : f32
    %46 = vector.broadcast %cst_26 : f32 to vector<1x128xf32>
    %47 = arith.divf %45, %46 : vector<1x128xf32>
    %cst_27 = arith.constant 9.99999974E-6 : f32
    %48 = vector.broadcast %cst_27 : f32 to vector<1x128xf32>
    %49 = arith.addf %47, %48 : vector<1x128xf32>
    %50 = math.rsqrt %49 : vector<1x128xf32>
    %51 = arith.mulf %30, %50 : vector<1x128xf32>
    %52 = arith.mulf %40, %51 : vector<1x128xf32>
    %53 = arith.subf %31, %52 : vector<1x128xf32>
    %54 = vector.broadcast %51 : vector<1x128xf32> to vector<128x128xf32>
    %55 = arith.mulf %36, %54 : vector<128x128xf32>
    %56 = vector.broadcast %53 : vector<1x128xf32> to vector<128x128xf32>
    %57 = arith.addf %55, %56 : vector<128x128xf32>
    %cst_28 = arith.constant 0.000000e+00 : f32
    %58 = vector.broadcast %cst_28 : f32 to vector<128x128xf32>
    %59 = arith.maximumf %57, %58 : vector<128x128xf32>
    %60 = arith.truncf %59 : vector<128x128xf32> to vector<128x128xbf16>
    %c0_29 = arith.constant 0 : index
    %c0_30 = arith.constant 0 : index
    %61 = vector.load %arg11[%c0_29, %c0_30] : memref<1x128xf32, #tpu.memory_space<vmem>>, vector<1x128xf32>
    %c0_31 = arith.constant 0 : index
    %c0_32 = arith.constant 0 : index
    %62 = vector.load %arg8[%c0_31, %c0_32] : memref<128x128xbf16, #tpu.memory_space<vmem>>, vector<128x128xbf16>
    %cst_33 = arith.constant dense<0.000000e+00> : vector<128x128xf32>
    %63 = tpu.matmul %60, %62, %cst_33 {dimension_numbers = #tpu.dot_dimension_numbers<[1], [0], [0], [1], [0, 0, 1, 1], [], []>} : vector<128x128xbf16>, vector<128x128xbf16>, vector<128x128xf32> -> vector<128x128xf32>
    %c0_34 = arith.constant 0 : index
    %c0_35 = arith.constant 0 : index
    %64 = vector.load %arg9[%c0_34, %c0_35] : memref<128x128xbf16, #tpu.memory_space<vmem>>, vector<128x128xbf16>
    %cst_36 = arith.constant dense<0.000000e+00> : vector<128x128xf32>
    %65 = tpu.matmul %29, %64, %cst_36 {dimension_numbers = #tpu.dot_dimension_numbers<[1], [0], [0], [1], [0, 0, 1, 1], [], []>} : vector<128x128xbf16>, vector<128x128xbf16>, vector<128x128xf32> -> vector<128x128xf32>
    %66 = arith.addf %63, %65 : vector<128x128xf32>
    %c0_37 = arith.constant 0 : index
    %c0_38 = arith.constant 0 : index
    %67 = vector.load %arg10[%c0_37, %c0_38] : memref<128x128xbf16, #tpu.memory_space<vmem>>, vector<128x128xbf16>
    %cst_39 = arith.constant dense<0.000000e+00> : vector<128x128xf32>
    %68 = tpu.matmul %1, %67, %cst_39 {dimension_numbers = #tpu.dot_dimension_numbers<[1], [0], [0], [1], [0, 0, 1, 1], [], []>} : vector<128x128xbf16>, vector<128x128xbf16>, vector<128x128xf32> -> vector<128x128xf32>
    %69 = arith.addf %66, %68 : vector<128x128xf32>
    %70 = vector.broadcast %61 : vector<1x128xf32> to vector<128x128xf32>
    %71 = arith.addf %69, %70 : vector<128x128xf32>
    %c0_40 = arith.constant 0 : index
    %c0_41 = arith.constant 0 : index
    %72 = vector.load %arg12[%c0_40, %c0_41] : memref<128x128xf32, #tpu.memory_space<vmem>>, vector<128x128xf32>
    tpu.vector_store %arg12[%c0_40, %c0_41], %71 {strides = array<i32>} : memref<128x128xf32, #tpu.memory_space<vmem>>, vector<128x128xf32>,
    return
  }
}

</mosaic_0001>

<bundles_post_ra>
// kernel: tpu_custom_call.1
= control target key start
LH: loop header
LB: loop body
LE: loop exit
PB: predicated region body
PF: predicated region fallthrough
CT: control target
= control target key end

     0   :  { %17 = vsyncpa [#allocation3], 0  ;;  %s2487_s0 = inlined_call_operand.hbm [shape: f32[128,128], index: 0, kind: input, shape index: {}]   ;;  %s2488_s1 = inlined_call_operand.hbm [shape: bf16[128,128], index: 1, kind: input, shape index: {}]   ;;  %s2489_s2 = inlined_call_operand.vmem [shape: f32[1,128], index: 2, kind: input, shape index: {}]   ;;  %s2490_s3 = inlined_call_operand.vmem [shape: f32[1,128], index: 3, kind: input, shape index: {}]   ;;  %s2491_s4 = inlined_call_operand.hbm [shape: bf16[128,128], index: 4, kind: input, shape index: {}]   ;;  %s2492_s5 = inlined_call_operand.hbm [shape: bf16[128,128], index: 5, kind: input, shape index: {}]   ;;  %s2493_s6 = inlined_call_operand.vmem [shape: f32[1,128], index: 6, kind: input, shape index: {}]   ;;  %s2494_s7 = inlined_call_operand.vmem [shape: f32[1,128], index: 7, kind: input, shape index: {}]   ;;  %s2495_s8 = inlined_call_operand.hbm [shape: bf16[128,128], index: 8, kind: input, shape index: {}]   ;;  %s2496_s9 = inlined_call_operand.hbm [shape: bf16[128,128], index: 9, kind: input, shape index: {}]   ;;  %s2497_s10 = inlined_call_operand.hbm [shape: bf16[128,128], index: 10, kind: input, shape index: {}]   ;;  %s2498_s11 = inlined_call_operand.vmem [shape: f32[1,128], index: 11, kind: input, shape index: {}]   ;;  %s2499_s12 = inlined_call_operand.hbm [shape: f32[128,128], index: 12, kind: output, shape index: {}]  }
   0x1   :  { %18 = vsyncpa [#allocation6], 0 }
   0x2   :  { %19 = vsyncpa [#allocation9], 0 }
   0x3   :  { %20 = vsyncpa [#allocation12], 0 }
   0x4   :  { %21 = vsyncpa [#allocation4], 0  ;;  %s2077_s21 = smov [#allocation5]  }
   0x5   :  { %s39_s22 = sshll.u32 %s2077_s21, 4  ;;  %s40_s22 = int_to_ptr.vmem [resolvable:$true] %s39_s22 }
   0x6   :  { %s1915_s23 = scalar_lea.vmem %s40_s22, 1024  ;;  %p1920_p1 = scmp.lt.s32.totalorder %s40_s22, %s40_s22 }
   0x7   :  { %p1916_p0 = scmp.ne.s32.totalorder %s40_s22, %s1915_s23  ;;  %p1921_p2 = scmp.lt.s32.totalorder %s1915_s23, %s1915_s23 }
   0x9   :  { %p1922_p3 = por %p1921_p2, %p1920_p1 }
   0xb   :  { %p1923_p4 = pnand %p1922_p3, %p1916_p0 }
   0xd   :  { %1926 = shalt.err (!%p1923_p4)
}
   0xe   :  { %s2078_s24 = smov 64   ;;  %s2079_s25 = smov 4  }
   0xf   :  { %45 = dma.hbm_to_vmem [thread:$0]  %s2488_s1, 1024, %s40_s22, [#allocation6], %s2078_s24, %s2078_s24, %s2079_s25  }
  0x10   :  { %s2080_s28 = smov [#allocation8]   ;;  %s2081_s30 = smov [#allocation11]  }
  0x11   :  { %s67_s29 = sshll.u32 %s2080_s28, 4  ;;  %s95_s13 = sshll.u32 %s2081_s30, 4  ;;  %s68_s29 = int_to_ptr.vmem [resolvable:$true] %s67_s29  ;;  %s96_s13 = int_to_ptr.vmem [resolvable:$true] %s95_s13 }
  0x12   :  { %s1935_s14 = scalar_lea.vmem %s68_s29, 1024  ;;  %p1940_p6 = scmp.lt.s32.totalorder %s68_s29, %s68_s29 }
  0x13   :  { %p1936_p5 = scmp.ne.s32.totalorder %s68_s29, %s1935_s14  ;;  %p1941_p7 = scmp.lt.s32.totalorder %s1935_s14, %s1935_s14 }
  0x15   :  { %p1942_p8 = por %p1941_p7, %p1940_p6 }
  0x17   :  { %p1943_p9 = pnand %p1942_p8, %p1936_p5 }
  0x19   :  { %1946 = shalt.err (!%p1943_p9)
}
  0x1a   :  { %73 = dma.hbm_to_vmem [thread:$0]  %s2492_s5, 1024, %s68_s29, [#allocation9], %s2078_s24, %s2078_s24, %s2079_s25  }
  0x1b   :  { %s1955_s1 = scalar_lea.vmem %s96_s13, 1024  ;;  %p1960_p11 = scmp.lt.s32.totalorder %s96_s13, %s96_s13 }
  0x1c   :  { %p1956_p10 = scmp.ne.s32.totalorder %s96_s13, %s1955_s1  ;;  %p1961_p12 = scmp.lt.s32.totalorder %s1955_s1, %s1955_s1 }
  0x1e   :  { %p1962_p13 = por %p1961_p12, %p1960_p11 }
  0x20   :  { %p1963_p0 = pnand %p1962_p13, %p1956_p10 }
  0x22   :  { %1966 = shalt.err (!%p1963_p0)
}
  0x23   :  { %101 = dma.hbm_to_vmem [thread:$0]  %s2496_s9, 1024, %s96_s13, [#allocation12], %s2078_s24, %s2078_s24, %s2079_s25  }
  0x24   :  { %s2082_s19 = smov [#allocation2]  }
  0x25   :  { %s27_s20 = sshll.u32 %s2082_s19, 4  ;;  %s28_s20 = int_to_ptr.vmem [resolvable:$true] %s27_s20 }
  0x26   :  { %s1975_s21 = scalar_lea.vmem %s28_s20, 2048  ;;  %p1980_p2 = scmp.lt.s32.totalorder %s28_s20, %s28_s20 }
  0x27   :  { %p1976_p1 = scmp.ne.s32.totalorder %s28_s20, %s1975_s21  ;;  %p1981_p3 = scmp.lt.s32.totalorder %s1975_s21, %s1975_s21 }
  0x29   :  { %p1982_p4 = por %p1981_p3, %p1980_p2 }
  0x2b   :  { %p1983_p5 = pnand %p1982_p4, %p1976_p1 }
  0x2d   :  { %1986 = shalt.err (!%p1983_p5)
}
  0x2e   :  { %s2083_s5 = smov 128   ;;  %s2084_s22 = smov 8  }
  0x2f   :  { %33 = dma.hbm_to_vmem [thread:$0]  %s2487_s0, 2048, %s28_s20, [#allocation3], %s2083_s5, %s2083_s5, %s2084_s22  }
  0x30   :  { %s2085_s9 = smov [#allocation7]   ;;  %s2086_s28 = smov [#allocation10]  }
  0x31   :  { %s55_s27 = sshll.u32 %s2085_s9, 4  ;;  %s83_s29 = sshll.u32 %s2086_s28, 4  ;;  %s56_s27 = int_to_ptr.vmem [resolvable:$true] %s55_s27  ;;  %s84_s29 = int_to_ptr.vmem [resolvable:$true] %s83_s29 }
  0x32   :  { %s1995_s30 = scalar_lea.vmem %s56_s27, 1024  ;;  %p2000_p7 = scmp.lt.s32.totalorder %s56_s27, %s56_s27 }
  0x33   :  { %p1996_p6 = scmp.ne.s32.totalorder %s56_s27, %s1995_s30  ;;  %p2001_p8 = scmp.lt.s32.totalorder %s1995_s30, %s1995_s30 }
  0x35   :  { %p2002_p9 = por %p2001_p8, %p2000_p7 }
  0x37   :  { %p2003_p10 = pnand %p2002_p9, %p1996_p6 }
  0x39   :  { %2006 = shalt.err (!%p2003_p10)
}
  0x3a   :  { %61 = dma.hbm_to_vmem [thread:$0]  %s2491_s4, 1024, %s56_s27, [#allocation6], %s2078_s24, %s2078_s24, %s2079_s25  }
  0x3b   :  { %s2015_s0 = scalar_lea.vmem %s84_s29, 1024  ;;  %p2020_p12 = scmp.lt.s32.totalorder %s84_s29, %s84_s29 }
  0x3c   :  { %p2016_p11 = scmp.ne.s32.totalorder %s84_s29, %s2015_s0  ;;  %p2021_p13 = scmp.lt.s32.totalorder %s2015_s0, %s2015_s0 }
  0x3e   :  { %p2022_p0 = por %p2021_p13, %p2020_p12 }
  0x40   :  { %p2023_p1 = pnand %p2022_p0, %p2016_p11 }
  0x42   :  { %2026 = shalt.err (!%p2023_p1)
}
  0x43   :  { %89 = dma.hbm_to_vmem [thread:$0]  %s2495_s8, 1024, %s84_s29, [#allocation9], %s2078_s24, %s2078_s24, %s2079_s25  }
  0x44   :  { %s2087_s1 = smov [#allocation13]  }
  0x45   :  { %s107_s17 = sshll.u32 %s2087_s1, 4  ;;  %s108_s17 = int_to_ptr.vmem [resolvable:$true] %s107_s17 }
  0x46   :  { %s2035_s18 = scalar_lea.vmem %s108_s17, 1024  ;;  %p2040_p3 = scmp.lt.s32.totalorder %s108_s17, %s108_s17 }
  0x47   :  { %p2036_p2 = scmp.ne.s32.totalorder %s108_s17, %s2035_s18  ;;  %p2041_p4 = scmp.lt.s32.totalorder %s2035_s18, %s2035_s18 }
  0x49   :  { %p2042_p5 = por %p2041_p4, %p2040_p3 }
  0x4b   :  { %p2043_p6 = pnand %p2042_p5, %p2036_p2 }
  0x4d   :  { %2046 = shalt.err (!%p2043_p6)
}
  0x4e   :  { %113 = dma.hbm_to_vmem [thread:$0]  %s2497_s10, 1024, %s108_s17, [#allocation12], %s2078_s24, %s2078_s24, %s2079_s25  }
  0x4f   :  { %2067 = dma.done.wait [#allocation3], 2048  }
  0x50   :  { %2068 = vsyncadd [#allocation3], 4294965248 }
  0x51   :  { %2069 = dma.done.wait [#allocation6], 2048  }
  0x52   :  { %2070 = vsyncadd [#allocation6], 4294965248 }
  0x53   :  { %2071 = dma.done.wait [#allocation9], 2048  }
  0x54   :  { %2072 = vsyncadd [#allocation9], 4294965248 }
  0x55   :  { %2073 = dma.done.wait [#allocation12], 2048  }
  0x56   :  { %2074 = vsyncadd [#allocation12], 4294965248  ;;  %v1855_v0 = vld [vmem:[#allocation5 + $0x38] sm:$0xff]   ;;  %v1856_v1 = vld [vmem:[#allocation5 + $0x30] sm:$0xff]  }
  0x57   :  { %1651 = vmatprep.subr.bf16.mxu0 %v1855_v0  ;;  %v1857_v2 = vld [vmem:[#allocation5 + $0x28] sm:$0xff]   ;;  %v1858_v3 = vld [vmem:[#allocation5 + $0x20] sm:$0xff]   ;;  %v1859_v7 = vld [vmem:[#allocation5 + $0x18] sm:$0xff]  }
  0x58   :  { %1652 = vmatpush3.bf16.msra.mxu0 %v1855_v0  ;;  %v138_v4 = vld [vmem:[#allocation2] sm:$0xff]  ;;  %v139_v5 = vld [vmem:[#allocation2 + $0x8] sm:$0xff]  ;;  %v1860_v8 = vld [vmem:[#allocation5 + $0x10] sm:$0xff]  }
  0x59   :  { %1653 = vmatprep.subr.bf16.mxu0 %v1856_v1  ;;  %v2196_v6 = vpack.c.bf16 %v139_v5, %v138_v4  ;;  %v1861_v9 = vld [vmem:[#allocation5 + $0x8] sm:$0xff]   ;;  %v1862_v10 = vld [vmem:[#allocation5] sm:$0xff]   ;;  %v140_v11 = vld [vmem:[#allocation2 + $0x10] sm:$0xff] }
  0x5a   :  { %v141_v12 = vld [vmem:[#allocation2 + $0x18] sm:$0xff]  ;;  %v142_v13 = vld [vmem:[#allocation2 + $0x20] sm:$0xff]  ;;  %v143_v14 = vld [vmem:[#allocation2 + $0x28] sm:$0xff] }
  0x5b   :  { %1667 = vmatprep.mubr.bf16.mxu0 %v2196_v6  ;;  %1699 = vmatprep.mubr.bf16.mxu1 %v2196_v6  ;;  %v2200_v15 = vpack.c.bf16 %v141_v12, %v140_v11  ;;  %v2202_v16 = vpack.c.bf16 %v143_v14, %v142_v13  ;;  %v144_v17 = vld [vmem:[#allocation2 + $0x30] sm:$0xff]  ;;  %v145_v18 = vld [vmem:[#allocation2 + $0x38] sm:$0xff]  ;;  %v146_v19 = vld [vmem:[#allocation2 + $0x40] sm:$0xff] }
  0x5c   :  { %1654 = vmatpush3.bf16.msra.mxu0 %v1856_v1  ;;  %v147_v20 = vld [vmem:[#allocation2 + $0x48] sm:$0xff]  ;;  %v2206_v21 = vpack.c.bf16 %v145_v18, %v144_v17  ;;  %v148_v23 = vld [vmem:[#allocation2 + $0x50] sm:$0xff]  ;;  %v149_v24 = vld [vmem:[#allocation2 + $0x58] sm:$0xff] }
  0x5d   :  { %1655 = vmatprep.subr.bf16.mxu0 %v1857_v2  ;;  %v2208_v22 = vpack.c.bf16 %v147_v20, %v146_v19  ;;  %v150_v25 = vld [vmem:[#allocation2 + $0x60] sm:$0xff]  ;;  %v151_v26 = vld [vmem:[#allocation2 + $0x68] sm:$0xff]  ;;  %v2212_v27 = vpack.c.bf16 %v149_v24, %v148_v23  ;;  %v152_v29 = vld [vmem:[#allocation2 + $0x70] sm:$0xff] }
  0x5e   :  { %v2214_v28 = vpack.c.bf16 %v151_v26, %v150_v25  ;;  %v153_v30 = vld [vmem:[#allocation2 + $0x78] sm:$0xff]  ;;  %v1864_v33 = vld [vmem:[#allocation8 + $0x30] sm:$0xff]   ;;  %v1865_v34 = vld [vmem:[#allocation8 + $0x28] sm:$0xff]  }
  0x5f   :  { %v2218_v31 = vpack.c.bf16 %v153_v30, %v152_v29  ;;  %v1863_v32 = vld [vmem:[#allocation8 + $0x38] sm:$0xff]   ;;  %v1866_v35 = vld [vmem:[#allocation8 + $0x20] sm:$0xff]   ;;  %v1868_v37 = vld [vmem:[#allocation8 + $0x10] sm:$0xff]  }
  0x60   :  { %1656 = vmatpush3.bf16.msra.mxu0 %v1857_v2  ;;  %1683 = vmatprep.subr.bf16.mxu1 %v1863_v32  ;;  %v1867_v36 = vld [vmem:[#allocation8 + $0x18] sm:$0xff]   ;;  %v1869_v38 = vld [vmem:[#allocation8 + $0x8] sm:$0xff]   ;;  %v1870_v39 = vld [vmem:[#allocation8] sm:$0xff]  }
  0x61   :  { %1657 = vmatprep.subr.bf16.mxu0 %v1858_v3  ;;  %1684 = vmatpush3.bf16.msra.mxu1 %v1863_v32  ;;  %v1871_v40 = vld [vmem:[#allocation7 + $0x38] sm:$0xff]   ;;  %v1873_v42 = vld [vmem:[#allocation7 + $0x30] sm:$0xff]   ;;  %v1875_v44 = vld [vmem:[#allocation7 + $0x28] sm:$0xff]  }
  0x62   :  { %1685 = vmatprep.subr.bf16.mxu1 %v1864_v33  ;;  %v1872_v41 = vld [vmem:[#allocation11 + $0x38] sm:$0xff]   ;;  %v1874_v43 = vld [vmem:[#allocation11 + $0x30] sm:$0xff]   ;;  %v1876_v45 = vld [vmem:[#allocation11 + $0x28] sm:$0xff]  }
  0x63   :  { %v1877_v46 = vld [vmem:[#allocation7 + $0x20] sm:$0xff]   ;;  %v1879_v48 = vld [vmem:[#allocation7 + $0x18] sm:$0xff]   ;;  %v1881_v50 = vld [vmem:[#allocation7 + $0x10] sm:$0xff]  }
  0x64   :  { %1658 = vmatpush3.bf16.msra.mxu0 %v1858_v3  ;;  %v1878_v47 = vld [vmem:[#allocation11 + $0x20] sm:$0xff]   ;;  %v1880_v49 = vld [vmem:[#allocation11 + $0x18] sm:$0xff]   ;;  %v1882_v51 = vld [vmem:[#allocation11 + $0x10] sm:$0xff]  }
  0x65   :  { %1659 = vmatprep.subr.bf16.mxu0 %v1859_v7  ;;  %1686 = vmatpush3.bf16.msra.mxu1 %v1864_v33  ;;  %v1883_v52 = vld [vmem:[#allocation7 + $0x8] sm:$0xff]   ;;  %v1885_v54 = vld [vmem:[#allocation7] sm:$0xff]  }
  0x66   :  { %1687 = vmatprep.subr.bf16.mxu1 %v1865_v34  ;;  %v1884_v53 = vld [vmem:[#allocation11 + $0x8] sm:$0xff]   ;;  %v1886_v55 = vld [vmem:[#allocation11] sm:$0xff]  }
  0x68   :  { %1660 = vmatpush3.bf16.msra.mxu0 %v1859_v7 }
  0x69   :  { %1661 = vmatprep.subr.bf16.mxu0 %v1860_v8  ;;  %1688 = vmatpush3.bf16.msra.mxu1 %v1865_v34 }
  0x6a   :  { %1689 = vmatprep.subr.bf16.mxu1 %v1866_v35 }
  0x6c   :  { %1662 = vmatpush3.bf16.msra.mxu0 %v1860_v8 }
  0x6d   :  { %1663 = vmatprep.subr.bf16.mxu0 %v1861_v9  ;;  %1690 = vmatpush3.bf16.msra.mxu1 %v1866_v35 }
  0x6e   :  { %1691 = vmatprep.subr.bf16.mxu1 %v1867_v36 }
  0x70   :  { %1664 = vmatpush3.bf16.msra.mxu0 %v1861_v9 }
  0x71   :  { %1665 = vmatprep.subr.bf16.mxu0 %v1862_v10  ;;  %1692 = vmatpush3.bf16.msra.mxu1 %v1867_v36 }
  0x72   :  { %1693 = vmatprep.subr.bf16.mxu1 %v1868_v37 }
  0x74   :  { %1666 = vmatpush3.bf16.msra.mxu0 %v1862_v10 }
  0x75   :  { %1694 = vmatpush3.bf16.msra.mxu1 %v1868_v37  ;;  %1715 = vmatprep.subr.bf16.mxu0 %v1871_v40 }
  0x76   :  { %1695 = vmatprep.subr.bf16.mxu1 %v1869_v38 }
  0x77   :  { %1668 = vmatmul.mubr.bf16.vlgmr.msra.gmra.mxu0 %v2200_v15 }
  0x78   :  { %1671 = vmatprep.mubr.bf16.mxu0 %v2202_v16  ;;  %1716 = vmatpush3.bf16.msra.mxu0 %v1871_v40 }
  0x79   :  { %1696 = vmatpush3.bf16.msra.mxu1 %v1869_v38  ;;  %1717 = vmatprep.subr.bf16.mxu0 %v1873_v42 }
  0x7a   :  { %1697 = vmatprep.subr.bf16.mxu1 %v1870_v39 }
  0x7c   :  { %1718 = vmatpush3.bf16.msra.mxu0 %v1873_v42 }
  0x7d   :  { %1698 = vmatpush3.bf16.msra.mxu1 %v1870_v39  ;;  %1719 = vmatprep.subr.bf16.mxu0 %v1875_v44 }
  0x7e   :  { %1747 = vmatprep.subr.bf16.mxu1 %v1872_v41 }
  0x7f   :  { %1672 = vmatmul.mubr.bf16.gmra.mxu0 %v2206_v21 }
  0x80   :  { %1675 = vmatprep.mubr.bf16.mxu0 %v2208_v22  ;;  %1700 = vmatmul.mubr.bf16.vlgmr.msra.gmra.mxu1 %v2200_v15 }
  0x81   :  { %1748 = vmatpush3.bf16.msra.mxu1 %v1872_v41  ;;  %1703 = vmatprep.mubr.bf16.mxu1 %v2202_v16 }
  0x82   :  { %1749 = vmatprep.subr.bf16.mxu1 %v1874_v43  ;;  %1720 = vmatpush3.bf16.msra.mxu0 %v1875_v44 }
  0x83   :  { %1721 = vmatprep.subr.bf16.mxu0 %v1877_v46 }
  0x85   :  { %1750 = vmatpush3.bf16.msra.mxu1 %v1874_v43 }
  0x86   :  { %1751 = vmatprep.subr.bf16.mxu1 %v1876_v45  ;;  %1722 = vmatpush3.bf16.msra.mxu0 %v1877_v46 }
  0x87   :  { %1676 = vmatmul.mubr.bf16.gmra.mxu0 %v2212_v27  ;;  %1723 = vmatprep.subr.bf16.mxu0 %v1879_v48 }
  0x88   :  { %1679 = vmatprep.mubr.bf16.mxu0 %v2214_v28  ;;  %1704 = vmatmul.mubr.bf16.gmra.mxu1 %v2206_v21 }
  0x89   :  { %1752 = vmatpush3.bf16.msra.mxu1 %v1876_v45  ;;  %1707 = vmatprep.mubr.bf16.mxu1 %v2208_v22 }
  0x8a   :  { %1753 = vmatprep.subr.bf16.mxu1 %v1878_v47  ;;  %1724 = vmatpush3.bf16.msra.mxu0 %v1879_v48 }
  0x8b   :  { %1725 = vmatprep.subr.bf16.mxu0 %v1881_v50 }
  0x8d   :  { %1754 = vmatpush3.bf16.msra.mxu1 %v1878_v47 }
  0x8e   :  { %1755 = vmatprep.subr.bf16.mxu1 %v1880_v49  ;;  %1726 = vmatpush3.bf16.msra.mxu0 %v1881_v50 }
  0x8f   :  { %1680 = vmatmul.mubr.bf16.gmra.mxu0 %v2218_v31  ;;  %1727 = vmatprep.subr.bf16.mxu0 %v1883_v52 }
  0x90   :  { %1708 = vmatmul.mubr.bf16.gmra.mxu1 %v2212_v27 }
  0x91   :  { %1756 = vmatpush3.bf16.msra.mxu1 %v1880_v49  ;;  %1711 = vmatprep.mubr.bf16.mxu1 %v2214_v28 }
  0x92   :  { %1757 = vmatprep.subr.bf16.mxu1 %v1882_v51  ;;  %1728 = vmatpush3.bf16.msra.mxu0 %v1883_v52 }
  0x93   :  { %1729 = vmatprep.subr.bf16.mxu0 %v1885_v54 }
  0x95   :  { %1758 = vmatpush3.bf16.msra.mxu1 %v1882_v51 }
  0x96   :  { %1759 = vmatprep.subr.bf16.mxu1 %v1884_v53  ;;  %1730 = vmatpush3.bf16.msra.mxu0 %v1885_v54 }
  0x98   :  { %1712 = vmatmul.mubr.bf16.gmra.mxu1 %v2218_v31 }
  0x99   :  { %1760 = vmatpush3.bf16.msra.mxu1 %v1884_v53 }
  0x9a   :  { %1761 = vmatprep.subr.bf16.mxu1 %v1886_v55 }
  0x9d   :  { %1762 = vmatpush3.bf16.msra.mxu1 %v1886_v55 }
 0x137   :  { %v2228_v56 = vpop.f32.mrf.mxu0 }
 0x139   :  { %v2230_v57 = vpop.f32.mrf.mxu0 }
 0x13b   :  { %v2232_v58 = vpop.f32.mrf.mxu0 }
 0x13d   :  { %v2234_v59 = vpop.f32.mrf.mxu0 }
 0x13e   :  { %v325_v60 = vadd.f32 %v2234_v59, %v2230_v57 }
 0x13f   :  { %v2238_v61 = vpop.f32.mrf.mxu0 }
 0x140   :  { %v326_v62 = vadd.f32 %v2228_v56, %v325_v60 }
 0x141   :  { %v2241_v63 = vpop.f32.mrf.mxu0 }
 0x142   :  { %v327_v0 = vadd.f32 %v2232_v58, %v326_v62 }
 0x143   :  { %v2244_v1 = vpop.f32.mrf.mxu0 }
 0x144   :  { %v328_v2 = vadd.f32 %v327_v0, %v2241_v63 }
 0x145   :  { %v2247_v3 = vpop.f32.mrf.mxu0 }
 0x146   :  { %v329_v4 = vadd.f32 %v328_v2, %v2247_v3 }
 0x147   :  { %v2250_v5 = vpop.f32.mrf.mxu0 }
 0x148   :  { %v330_v7 = vadd.f32 %v2238_v61, %v329_v4 }
 0x149   :  { %v2253_v8 = vpop.f32.mrf.mxu0 }
 0x14a   :  { %v331_v9 = vadd.f32 %v2244_v1, %v330_v7 }
 0x14b   :  { %v2256_v10 = vpop.f32.mrf.mxu0 }
 0x14c   :  { %v332_v11 = vadd.f32 %v331_v9, %v2253_v8 }
 0x14d   :  { %v2259_v12 = vpop.f32.mrf.mxu0 }
 0x14e   :  { %v333_v13 = vadd.f32 %v332_v11, %v2259_v12 }
 0x14f   :  { %v2262_v14 = vpop.f32.mrf.mxu0 }
 0x150   :  { %v334_v17 = vadd.f32 %v2250_v5, %v333_v13 }
 0x151   :  { %v2265_v18 = vpop.f32.mrf.mxu0 }
 0x152   :  { %v335_v19 = vadd.f32 %v2256_v10, %v334_v17 }
 0x153   :  { %v2268_v20 = vpop.f32.mrf.mxu0 }
 0x154   :  { %v336_v23 = vadd.f32 %v335_v19, %v2265_v18 }
 0x155   :  { %v2271_v24 = vpop.f32.mrf.mxu0 }
 0x156   :  { %v337_v25 = vadd.f32 %v336_v23, %v2271_v24 }
 0x158   :  { %v338_v26 = vadd.f32 %v2262_v14, %v337_v25 }
 0x15a   :  { %v339_v29 = vadd.f32 %v2268_v20, %v338_v26 }
 0x15c   :  { %v340_v30 = vrot.slane %v339_v29, 4 }
 0x15e   :  { %v341_v32 = vadd.f32 %v340_v30, %v339_v29 }
 0x160   :  { %v342_v33 = vrot.slane %v341_v32, 2 }
 0x162   :  { %v343_v34 = vadd.f32 %v342_v33, %v341_v32 }
 0x164   :  { %v344_v35 = vrot.slane %v343_v34, 1 }
 0x166   :  { %v345_v36 = vadd.f32 %v344_v35, %v343_v34 }
 0x168   :  { %v2276_v37 = vmul.f32 0.0078125, %v345_v36 }
 0x16a   :  { %v348_v38 = vsub.f32 %v2230_v57, %v2276_v37  ;;  %v349_v39 = vsub.f32 %v2234_v59, %v2276_v37  ;;  %v350_v40 = vsub.f32 %v2228_v56, %v2276_v37  ;;  %v351_v43 = vsub.f32 %v2232_v58, %v2276_v37 }
 0x16b   :  { %v352_v44 = vsub.f32 %v2241_v63, %v2276_v37  ;;  %v353_v47 = vsub.f32 %v2247_v3, %v2276_v37  ;;  %v354_v50 = vsub.f32 %v2238_v61, %v2276_v37  ;;  %v355_v53 = vsub.f32 %v2244_v1, %v2276_v37 }
 0x16c   :  { %v364_v41 = vmul.f32 %v348_v38, %v348_v38  ;;  %v365_v42 = vmul.f32 %v349_v39, %v349_v39  ;;  %v366_v45 = vmul.f32 %v350_v40, %v350_v40  ;;  %v367_v48 = vmul.f32 %v351_v43, %v351_v43 }
 0x16d   :  { %v368_v51 = vmul.f32 %v352_v44, %v352_v44  ;;  %v369_v54 = vmul.f32 %v353_v47, %v353_v47  ;;  %v356_v60 = vsub.f32 %v2253_v8, %v2276_v37  ;;  %v370_v62 = vmul.f32 %v354_v50, %v354_v50 }
 0x16e   :  { %v380_v46 = vadd.f32 %v365_v42, %v364_v41  ;;  %v357_v2 = vsub.f32 %v2259_v12, %v2276_v37  ;;  %v371_v4 = vmul.f32 %v355_v53, %v355_v53  ;;  %v358_v9 = vsub.f32 %v2250_v5, %v2276_v37 }
 0x16f   :  { %v372_v11 = vmul.f32 %v356_v60, %v356_v60  ;;  %v359_v17 = vsub.f32 %v2256_v10, %v2276_v37  ;;  %v360_v25 = vsub.f32 %v2265_v18, %v2276_v37  ;;  %v361_v30 = vsub.f32 %v2271_v24, %v2276_v37  ;;  %v162_v60 = vld [vmem:[%s2489_s2] sm:$0x1] }
 0x170   :  { %v381_v49 = vadd.f32 %v380_v46, %v366_v45  ;;  %v373_v19 = vmul.f32 %v357_v2, %v357_v2  ;;  %v374_v26 = vmul.f32 %v358_v9, %v358_v9  ;;  %v362_v34 = vsub.f32 %v2262_v14, %v2276_v37 }
 0x171   :  { %v375_v32 = vmul.f32 %v359_v17, %v359_v17  ;;  %v376_v35 = vmul.f32 %v360_v25, %v360_v25  ;;  %v363_v38 = vsub.f32 %v2268_v20, %v2276_v37  ;;  %v377_v39 = vmul.f32 %v361_v30, %v361_v30 }
 0x172   :  { %v382_v52 = vadd.f32 %v381_v49, %v367_v48  ;;  %v378_v41 = vmul.f32 %v362_v34, %v362_v34 }
 0x173   :  { %v379_v43 = vmul.f32 %v363_v38, %v363_v38 }
 0x174   :  { %v383_v55 = vadd.f32 %v382_v52, %v368_v51 }
 0x176   :  { %v384_v0 = vadd.f32 %v383_v55, %v369_v54  ;;  %v408_v54 = vlaneseq }
 0x178   :  { %v385_v7 = vadd.f32 %v384_v0, %v370_v62  ;;  %v409_v55 = vshrl.u32 %v408_v54, 7 }
 0x17a   :  { %v386_v13 = vadd.f32 %v385_v7, %v371_v4  ;;  %v2313_v62 = vsub.s32 0, %v409_v55  ;;  %v163_v4 = vld [vmem:[%s2490_s3] sm:$0x1] }
 0x17c   :  { %v387_v23 = vadd.f32 %v386_v13, %v372_v11 }
 0x17e   :  { %v388_v29 = vadd.f32 %v387_v23, %v373_v19 }
 0x180   :  { %v389_v33 = vadd.f32 %v388_v29, %v374_v26 }
 0x182   :  { %v390_v36 = vadd.f32 %v389_v33, %v375_v32 }
 0x184   :  { %v391_v40 = vadd.f32 %v390_v36, %v376_v35 }
 0x186   :  { %v392_v42 = vadd.f32 %v391_v40, %v377_v39 }
 0x188   :  { %v393_v44 = vadd.f32 %v392_v42, %v378_v41 }
 0x18a   :  { %v394_v45 = vadd.f32 %v393_v44, %v379_v43 }
 0x18c   :  { %v395_v46 = vrot.slane %v394_v45, 4 }
 0x18e   :  { %v396_v47 = vadd.f32 %v395_v46, %v394_v45 }
 0x190   :  { %v397_v48 = vrot.slane %v396_v47, 2 }
 0x192   :  { %v398_v49 = vadd.f32 %v397_v48, %v396_v47 }
 0x194   :  { %v399_v50 = vrot.slane %v398_v49, 1 }
 0x196   :  { %v400_v51 = vadd.f32 %v399_v50, %v398_v49 }
 0x198   :  { %v401_v52 = vmul.f32 0.0078125, %v400_v51 }
 0x19a   :  { %v402_v53 = vadd.f32 1e-05, %v401_v52 }
 0x19c   :  { %1903 = vrsqrt.f32 %v402_v53 }
 0x1a9   :  { %v1904_v0 = vpop.eup %1903 }
 0x1aa   :  { %v404_v2 = vmul.f32 %v1904_v0, %v162_v60 }
 0x1ac   :  { %v405_v7 = vmul.f32 %v404_v2, %v2276_v37  ;;  %v411_v9 = vrot.slane %v404_v2, %v2313_v62 }
 0x1ae   :  { %v406_v11 = vsub.f32 %v163_v4, %v405_v7  ;;  %v413_v17 = vmul.f32 %v411_v9, %v2230_v57  ;;  %v414_v19 = vmul.f32 %v411_v9, %v2234_v59  ;;  %v415_v23 = vmul.f32 %v2228_v56, %v411_v9 }
 0x1af   :  { %v416_v25 = vmul.f32 %v2232_v58, %v411_v9  ;;  %v417_v26 = vmul.f32 %v411_v9, %v2241_v63  ;;  %v418_v29 = vmul.f32 %v411_v9, %v2247_v3  ;;  %v419_v57 = vmul.f32 %v2238_v61, %v411_v9 }
 0x1b0   :  { %v433_v13 = vrot.slane %v406_v11, %v2313_v62  ;;  %v420_v58 = vmul.f32 %v2244_v1, %v411_v9  ;;  %v421_v63 = vmul.f32 %v411_v9, %v2253_v8  ;;  %v422_v3 = vmul.f32 %v411_v9, %v2259_v12 }
 0x1b1   :  { %v423_v8 = vmul.f32 %v2250_v5, %v411_v9  ;;  %v424_v12 = vmul.f32 %v2256_v10, %v411_v9  ;;  %v426_v50 = vmul.f32 %v411_v9, %v2271_v24  ;;  %v425_v51 = vmul.f32 %v411_v9, %v2265_v18 }
 0x1b2   :  { %v435_v30 = vadd.f32 %v433_v13, %v413_v17  ;;  %v436_v32 = vadd.f32 %v433_v13, %v414_v19  ;;  %v437_v37 = vadd.f32 %v433_v13, %v415_v23  ;;  %v438_v33 = vadd.f32 %v433_v13, %v416_v25 }
 0x1b3   :  { %v439_v34 = vadd.f32 %v433_v13, %v417_v26  ;;  %v440_v35 = vadd.f32 %v433_v13, %v418_v29  ;;  %v441_v43 = vadd.f32 %v433_v13, %v419_v57  ;;  %v442_v44 = vadd.f32 %v433_v13, %v420_v58  ;;  %v1701_v29 = vpop.f32.mrf.mxu1  ;;  %v1895_v57 = vld [vmem:[#allocation13 + $0x18] sm:$0xff]   ;;  %v1898_v58 = vld [vmem:[#allocation10 + $0x10] sm:$0xff]  }
 0x1b4   :  { %v451_v36 = vmax.f32 %v435_v30, 0.0  ;;  %v452_v38 = vmax.f32 %v436_v32, 0.0  ;;  %v453_v39 = vmax.f32 %v437_v37, 0.0  ;;  %v454_v59 = vmax.f32 %v438_v33, 0.0  ;;  %v1889_v32 = vld [vmem:[#allocation13 + $0x30] sm:$0xff]  }
 0x1b5   :  { %v455_v40 = vmax.f32 %v439_v34, 0.0  ;;  %v456_v56 = vmax.f32 %v440_v35, 0.0  ;;  %v443_v46 = vadd.f32 %v433_v13, %v421_v63  ;;  %v444_v47 = vadd.f32 %v433_v13, %v422_v3  ;;  %v591_v30 = vpop.f32.mrf.mxu1  ;;  %v1890_v33 = vld [vmem:[#allocation10 + $0x30] sm:$0xff]   ;;  %v1891_v34 = vld [vmem:[#allocation13 + $0x28] sm:$0xff]  }
 0x1b6   :  { %v467_v41 = vpack.c.bf16 %v452_v38, %v451_v36  ;;  %v468_v42 = vpack.c.bf16 %v454_v59, %v453_v39  ;;  %v457_v61 = vmax.f32 %v441_v43, 0.0  ;;  %v458_v48 = vmax.f32 %v442_v44, 0.0  ;;  %v1892_v35 = vld [vmem:[#allocation10 + $0x28] sm:$0xff]   ;;  %v1893_v36 = vld [vmem:[#allocation13 + $0x20] sm:$0xff]  }
 0x1b7   :  { %v469_v45 = vpack.c.bf16 %v456_v56, %v455_v40  ;;  %v459_v1 = vmax.f32 %v443_v46, 0.0  ;;  %v460_v49 = vmax.f32 %v444_v47, 0.0  ;;  %v445_v53 = vadd.f32 %v433_v13, %v423_v8  ;;  %v1894_v39 = vld [vmem:[#allocation10 + $0x20] sm:$0xff]   ;;  %v1896_v40 = vld [vmem:[#allocation10 + $0x18] sm:$0xff]   ;;  %v1897_v56 = vld [vmem:[#allocation13 + $0x10] sm:$0xff]  }
 0x1b8   :  { %1731 = vmatprep.mubr.bf16.mxu0 %v467_v41  ;;  %1763 = vmatprep.mubr.bf16.mxu1 %v467_v41  ;;  %v470_v52 = vpack.c.bf16 %v458_v48, %v457_v61  ;;  %v446_v54 = vadd.f32 %v433_v13, %v424_v12  ;;  %v448_v55 = vadd.f32 %v433_v13, %v426_v50  ;;  %v1899_v41 = vld [vmem:[#allocation13 + $0x8] sm:$0xff]   ;;  %v1901_v44 = vld [vmem:[#allocation13] sm:$0xff]  }
 0x1b9   :  { %1732 = vmatmul.mubr.bf16.vlgmr.msra.gmra.mxu0 %v468_v42  ;;  %1764 = vmatmul.mubr.bf16.vlgmr.msra.gmra.mxu1 %v468_v42  ;;  %v471_v60 = vpack.c.bf16 %v460_v49, %v459_v1  ;;  %v447_v0 = vadd.f32 %v433_v13, %v425_v51  ;;  %v461_v2 = vmax.f32 %v445_v53, 0.0  ;;  %v427_v10 = vmul.f32 %v2262_v14, %v411_v9  ;;  %v2338_v14 = vpop.f32.mrf.mxu1  ;;  %v1900_v43 = vld [vmem:[#allocation10 + $0x8] sm:$0xff]   ;;  %v1902_v61 = vld [vmem:[#allocation10] sm:$0xff]  }
 0x1ba   :  { %1735 = vmatprep.mubr.bf16.mxu0 %v469_v45  ;;  %1767 = vmatprep.mubr.bf16.mxu1 %v469_v45  ;;  %v462_v4 = vmax.f32 %v446_v54, 0.0  ;;  %v464_v5 = vmax.f32 %v448_v55, 0.0  ;;  %v428_v24 = vmul.f32 %v2268_v20, %v411_v9  ;;  %v1887_v20 = vld [vmem:[#allocation13 + $0x38] sm:$0xff]  }
 0x1bb   :  { %v463_v7 = vmax.f32 %v447_v0, 0.0  ;;  %v449_v18 = vadd.f32 %v433_v13, %v427_v10  ;;  %1811 = vmatprep.subr.bf16.mxu1 %v1887_v20  ;;  %v594_v9 = vpop.f32.mrf.mxu1 }
 0x1bc   :  { %v472_v11 = vpack.c.bf16 %v462_v4, %v461_v2  ;;  %v450_v17 = vadd.f32 %v433_v13, %v428_v24  ;;  %1812 = vmatpush3.bf16.msra.mxu1 %v1887_v20  ;;  %v1888_v13 = vld [vmem:[#allocation10 + $0x38] sm:$0xff]  }
 0x1bd   :  { %v473_v19 = vpack.c.bf16 %v464_v5, %v463_v7  ;;  %v465_v23 = vmax.f32 %v449_v18, 0.0  ;;  %1779 = vmatprep.subr.bf16.mxu0 %v1888_v13  ;;  %1813 = vmatprep.subr.bf16.mxu1 %v1889_v32  ;;  %v2340_v37 = vpop.f32.mrf.mxu1 }
 0x1be   :  { %v466_v25 = vmax.f32 %v450_v17, 0.0  ;;  %1780 = vmatpush3.bf16.msra.mxu0 %v1888_v13 }
 0x1bf   :  { %1781 = vmatprep.subr.bf16.mxu0 %v1890_v33 }
 0x1c0   :  { %v474_v26 = vpack.c.bf16 %v466_v25, %v465_v23  ;;  %1814 = vmatpush3.bf16.msra.mxu1 %v1889_v32 }
 0x1c1   :  { %1736 = vmatmul.mubr.bf16.gmra.mxu0 %v470_v52  ;;  %1768 = vmatmul.mubr.bf16.gmra.mxu1 %v470_v52 }
 0x1c2   :  { %1739 = vmatprep.mubr.bf16.mxu0 %v471_v60  ;;  %1771 = vmatprep.mubr.bf16.mxu1 %v471_v60 }
 0x1c3   :  { %1815 = vmatprep.subr.bf16.mxu1 %v1891_v34  ;;  %1782 = vmatpush3.bf16.msra.mxu0 %v1890_v33 }
 0x1c4   :  { %1816 = vmatpush3.bf16.msra.mxu1 %v1891_v34  ;;  %1783 = vmatprep.subr.bf16.mxu0 %v1892_v35 }
 0x1c5   :  { %1817 = vmatprep.subr.bf16.mxu1 %v1893_v36 }
 0x1c7   :  { %1784 = vmatpush3.bf16.msra.mxu0 %v1892_v35 }
 0x1c8   :  { %1818 = vmatpush3.bf16.msra.mxu1 %v1893_v36  ;;  %1785 = vmatprep.subr.bf16.mxu0 %v1894_v39 }
 0x1c9   :  { %1740 = vmatmul.mubr.bf16.gmra.mxu0 %v472_v11  ;;  %1772 = vmatmul.mubr.bf16.gmra.mxu1 %v472_v11 }
 0x1ca   :  { %1743 = vmatprep.mubr.bf16.mxu0 %v473_v19  ;;  %1775 = vmatprep.mubr.bf16.mxu1 %v473_v19 }
 0x1cb   :  { %1819 = vmatprep.subr.bf16.mxu1 %v1895_v57  ;;  %1786 = vmatpush3.bf16.msra.mxu0 %v1894_v39 }
 0x1cc   :  { %1820 = vmatpush3.bf16.msra.mxu1 %v1895_v57  ;;  %1787 = vmatprep.subr.bf16.mxu0 %v1896_v40 }
 0x1cd   :  { %1821 = vmatprep.subr.bf16.mxu1 %v1897_v56 }
 0x1cf   :  { %1788 = vmatpush3.bf16.msra.mxu0 %v1896_v40 }
 0x1d0   :  { %1822 = vmatpush3.bf16.msra.mxu1 %v1897_v56  ;;  %1789 = vmatprep.subr.bf16.mxu0 %v1898_v58 }
 0x1d1   :  { %1744 = vmatmul.mubr.bf16.gmra.mxu0 %v474_v26  ;;  %1776 = vmatmul.mubr.bf16.gmra.mxu1 %v474_v26 }
 0x1d2   :  { %1827 = vmatprep.mubr.bf16.mxu1 %v2196_v6  ;;  %v607_v6 = vpop.f32.mrf.mxu1  ;;  %1823 = vmatprep.subr.bf16.mxu1 %v1899_v41 }
 0x1d3   :  { %1790 = vmatpush3.bf16.msra.mxu0 %v1898_v58 }
 0x1d4   :  { %v1706_v38 = vpop.f32.mrf.mxu1  ;;  %1824 = vmatpush3.bf16.msra.mxu1 %v1899_v41  ;;  %1791 = vmatprep.subr.bf16.mxu0 %v1900_v43 }
 0x1d5   :  { %1825 = vmatprep.subr.bf16.mxu1 %v1901_v44 }
 0x1d6   :  { %v610_v59 = vpop.f32.mrf.mxu1 }
 0x1d7   :  { %1792 = vmatpush3.bf16.msra.mxu0 %v1900_v43 }
 0x1d8   :  { %v1709_v3 = vpop.f32.mrf.mxu1  ;;  %1826 = vmatpush3.bf16.msra.mxu1 %v1901_v44  ;;  %1793 = vmatprep.subr.bf16.mxu0 %v1902_v61 }
 0x1da   :  { %v623_v46 = vpop.f32.mrf.mxu1 }
 0x1db   :  { %1828 = vmatmul.mubr.bf16.vlgmr.msra.gmra.mxu1 %v2200_v15  ;;  %1794 = vmatpush3.bf16.msra.mxu0 %v1902_v61 }
 0x1dc   :  { %v1710_v50 = vpop.f32.mrf.mxu1  ;;  %1831 = vmatprep.mubr.bf16.mxu1 %v2202_v16 }
 0x1de   :  { %v626_v0 = vpop.f32.mrf.mxu1 }
 0x1e0   :  { %v1713_v15 = vpop.f32.mrf.mxu1 }
 0x1e2   :  { %v639_v25 = vpop.f32.mrf.mxu1 }
 0x1e3   :  { %1832 = vmatmul.mubr.bf16.gmra.mxu1 %v2206_v21 }
 0x1e4   :  { %1835 = vmatprep.mubr.bf16.mxu1 %v2208_v22  ;;  %v1714_v13 = vpop.f32.mrf.mxu1 }
 0x1eb   :  { %1836 = vmatmul.mubr.bf16.gmra.mxu1 %v2212_v27 }
 0x1ec   :  { %1839 = vmatprep.mubr.bf16.mxu1 %v2214_v28 }
 0x1f3   :  { %1840 = vmatmul.mubr.bf16.gmra.mxu1 %v2218_v31 }
 0x279   :  { %v1733_v63 = vpop.f32.mrf.mxu0 }
 0x27a   :  { %v2346_v8 = vadd.f32 %v1733_v63, %v1701_v29 }
 0x27b   :  { %v736_v42 = vpop.f32.mrf.mxu0 }
 0x27c   :  { %v2342_v48 = vadd.f32 %v736_v42, %v591_v30 }
 0x27d   :  { %v1734_v45 = vpop.f32.mrf.mxu0 }
 0x27e   :  { %v2351_v52 = vadd.f32 %v1734_v45, %v2338_v14 }
 0x27f   :  { %v739_v47 = vpop.f32.mrf.mxu0 }
 0x280   :  { %v2344_v1 = vadd.f32 %v739_v47, %v594_v9 }
 0x281   :  { %v1737_v49 = vpop.f32.mrf.mxu0 }
 0x282   :  { %v799_v12 = vadd.f32 %v2344_v1, %v2342_v48  ;;  %v2363_v10 = vadd.f32 %v1737_v49, %v2340_v37 }
 0x283   :  { %v752_v51 = vpop.f32.mrf.mxu0 }
 0x284   :  { %v800_v53 = vadd.f32 %v799_v12, %v2346_v8  ;;  %v2355_v55 = vadd.f32 %v752_v51, %v607_v6  ;;  %v642_v6 = vpop.f32.mrf.mxu1 }
 0x285   :  { %v1738_v54 = vpop.f32.mrf.mxu0 }
 0x286   :  { %v801_v60 = vadd.f32 %v800_v53, %v2351_v52  ;;  %v2366_v18 = vadd.f32 %v1738_v54, %v1706_v38 }
 0x287   :  { %v755_v2 = vpop.f32.mrf.mxu0 }
 0x288   :  { %v802_v4 = vadd.f32 %v801_v60, %v2355_v55  ;;  %v2360_v7 = vadd.f32 %v755_v2, %v610_v59 }
 0x289   :  { %v1741_v5 = vpop.f32.mrf.mxu0 }
 0x28a   :  { %v803_v24 = vadd.f32 %v802_v4, %v2360_v7  ;;  %v2377_v20 = vadd.f32 %v1741_v5, %v1709_v3 }
 0x28b   :  { %v768_v11 = vpop.f32.mrf.mxu0 }
 0x28c   :  { %v804_v17 = vadd.f32 %v803_v24, %v2363_v10  ;;  %v2370_v16 = vadd.f32 %v768_v11, %v623_v46 }
 0x28d   :  { %v1742_v19 = vpop.f32.mrf.mxu0 }
 0x28e   :  { %v805_v23 = vadd.f32 %v804_v17, %v2366_v18  ;;  %v2380_v21 = vadd.f32 %v1742_v19, %v1710_v50 }
 0x28f   :  { %v771_v26 = vpop.f32.mrf.mxu0 }
 0x290   :  { %v806_v29 = vadd.f32 %v805_v23, %v2370_v16  ;;  %v2375_v30 = vadd.f32 %v771_v26, %v626_v0 }
 0x291   :  { %v1745_v14 = vpop.f32.mrf.mxu0 }
 0x292   :  { %v807_v9 = vadd.f32 %v806_v29, %v2375_v30  ;;  %v2391_v39 = vadd.f32 %v1745_v14, %v1713_v15 }
 0x293   :  { %v784_v32 = vpop.f32.mrf.mxu0 }
 0x294   :  { %v808_v37 = vadd.f32 %v807_v9, %v2377_v20  ;;  %v2384_v22 = vadd.f32 %v784_v32, %v639_v25 }
 0x295   :  { %v1746_v33 = vpop.f32.mrf.mxu0 }
 0x296   :  { %v809_v34 = vadd.f32 %v808_v37, %v2380_v21  ;;  %v2394_v59 = vadd.f32 %v1746_v33, %v1714_v13 }
 0x297   :  { %v787_v35 = vpop.f32.mrf.mxu0 }
 0x298   :  { %v810_v36 = vadd.f32 %v809_v34, %v2384_v22  ;;  %v2389_v38 = vadd.f32 %v787_v35, %v642_v6 }
 0x29a   :  { %v811_v57 = vadd.f32 %v810_v36, %v2389_v38 }
 0x29c   :  { %v812_v27 = vadd.f32 %v811_v57, %v2391_v39 }
 0x29e   :  { %v813_v40 = vadd.f32 %v812_v27, %v2394_v59 }
 0x2a0   :  { %v814_v56 = vrot.slane %v813_v40, 4 }
 0x2a2   :  { %v815_v28 = vadd.f32 %v814_v56, %v813_v40 }
 0x2a4   :  { %v816_v58 = vrot.slane %v815_v28, 2 }
 0x2a6   :  { %v817_v41 = vadd.f32 %v816_v58, %v815_v28 }
 0x2a8   :  { %v818_v63 = vrot.slane %v817_v41, 1 }
 0x2aa   :  { %v819_v3 = vadd.f32 %v818_v63, %v817_v41 }
 0x2ac   :  { %v820_v42 = vmul.f32 0.0078125, %v819_v3 }
 0x2ae   :  { %v821_v43 = vsub.f32 %v2342_v48, %v820_v42  ;;  %v822_v44 = vsub.f32 %v2344_v1, %v820_v42  ;;  %v823_v45 = vsub.f32 %v2346_v8, %v820_v42  ;;  %v824_v61 = vsub.f32 %v2351_v52, %v820_v42 }
 0x2af   :  { %v825_v31 = vsub.f32 %v2355_v55, %v820_v42  ;;  %v826_v50 = vsub.f32 %v2360_v7, %v820_v42  ;;  %v827_v54 = vsub.f32 %v2363_v10, %v820_v42  ;;  %v828_v2 = vsub.f32 %v2366_v18, %v820_v42 }
 0x2b0   :  { %v837_v46 = vmul.f32 %v821_v43, %v821_v43  ;;  %v838_v47 = vmul.f32 %v822_v44, %v822_v44  ;;  %v839_v49 = vmul.f32 %v823_v45, %v823_v45  ;;  %v840_v51 = vmul.f32 %v824_v61, %v824_v61 }
 0x2b1   :  { %v841_v60 = vmul.f32 %v825_v31, %v825_v31  ;;  %v842_v4 = vmul.f32 %v826_v50, %v826_v50  ;;  %v829_v24 = vsub.f32 %v2370_v16, %v820_v42  ;;  %v843_v15 = vmul.f32 %v827_v54, %v827_v54  ;;  %v475_v50 = vld [vmem:[%s2493_s6] sm:$0x1] }
 0x2b2   :  { %v853_v12 = vadd.f32 %v838_v47, %v837_v46  ;;  %v830_v17 = vsub.f32 %v2375_v30, %v820_v42  ;;  %v844_v19 = vmul.f32 %v828_v2, %v828_v2  ;;  %v831_v25 = vsub.f32 %v2377_v20, %v820_v42  ;;  %v476_v54 = vld [vmem:[%s2494_s7] sm:$0x1] }
 0x2b3   :  { %v845_v26 = vmul.f32 %v829_v24, %v829_v24  ;;  %v832_v14 = vsub.f32 %v2380_v21, %v820_v42  ;;  %v833_v32 = vsub.f32 %v2384_v22, %v820_v42  ;;  %v834_v34 = vsub.f32 %v2389_v38, %v820_v42 }
 0x2b4   :  { %v854_v53 = vadd.f32 %v853_v12, %v839_v49  ;;  %v846_v9 = vmul.f32 %v830_v17, %v830_v17  ;;  %v847_v37 = vmul.f32 %v831_v25, %v831_v25  ;;  %v835_v36 = vsub.f32 %v2391_v39, %v820_v42 }
 0x2b5   :  { %v848_v6 = vmul.f32 %v832_v14, %v832_v14  ;;  %v849_v57 = vmul.f32 %v833_v32, %v833_v32  ;;  %v836_v40 = vsub.f32 %v2394_v59, %v820_v42  ;;  %v850_v56 = vmul.f32 %v834_v34, %v834_v34 }
 0x2b6   :  { %v855_v0 = vadd.f32 %v854_v53, %v840_v51  ;;  %v851_v58 = vmul.f32 %v835_v36, %v835_v36 }
 0x2b7   :  { %v852_v63 = vmul.f32 %v836_v40, %v836_v40 }
 0x2b8   :  { %v856_v5 = vadd.f32 %v855_v0, %v841_v60 }
 0x2ba   :  { %v857_v11 = vadd.f32 %v856_v5, %v842_v4 }
 0x2bc   :  { %v858_v23 = vadd.f32 %v857_v11, %v843_v15 }
 0x2be   :  { %v859_v29 = vadd.f32 %v858_v23, %v844_v19 }
 0x2c0   :  { %v860_v13 = vadd.f32 %v859_v29, %v845_v26 }
 0x2c2   :  { %v861_v33 = vadd.f32 %v860_v13, %v846_v9 }
 0x2c4   :  { %v862_v35 = vadd.f32 %v861_v33, %v847_v37 }
 0x2c6   :  { %v863_v27 = vadd.f32 %v862_v35, %v848_v6 }
 0x2c8   :  { %v864_v28 = vadd.f32 %v863_v27, %v849_v57 }
 0x2ca   :  { %v865_v41 = vadd.f32 %v864_v28, %v850_v56 }
 0x2cc   :  { %v866_v3 = vadd.f32 %v865_v41, %v851_v58 }
 0x2ce   :  { %v867_v43 = vadd.f32 %v866_v3, %v852_v63 }
 0x2d0   :  { %v868_v44 = vrot.slane %v867_v43, 4 }
 0x2d2   :  { %v869_v45 = vadd.f32 %v868_v44, %v867_v43 }
 0x2d4   :  { %v870_v46 = vrot.slane %v869_v45, 2 }
 0x2d6   :  { %v871_v47 = vadd.f32 %v870_v46, %v869_v45 }
 0x2d8   :  { %v872_v61 = vrot.slane %v871_v47, 1 }
 0x2da   :  { %v873_v31 = vadd.f32 %v872_v61, %v871_v47 }
 0x2dc   :  { %v874_v49 = vmul.f32 0.0078125, %v873_v31 }
 0x2de   :  { %v875_v12 = vadd.f32 1e-05, %v874_v49 }
 0x2e0   :  { %1905 = vrsqrt.f32 %v875_v12 }
 0x2ed   :  { %v1906_v51 = vpop.eup %1905 }
 0x2ee   :  { %v877_v53 = vmul.f32 %v1906_v51, %v475_v50 }
 0x2f0   :  { %v878_v60 = vmul.f32 %v877_v53, %v820_v42  ;;  %v884_v0 = vrot.slane %v877_v53, %v2313_v62  ;;  %v1765_v53 = vpop.f32.mrf.mxu1 }
 0x2f2   :  { %v879_v2 = vsub.f32 %v476_v54, %v878_v60  ;;  %v886_v4 = vmul.f32 %v884_v0, %v2342_v48  ;;  %v887_v24 = vmul.f32 %v884_v0, %v2344_v1  ;;  %v888_v15 = vmul.f32 %v884_v0, %v2346_v8  ;;  %v1063_v54 = vpop.f32.mrf.mxu1 }
 0x2f3   :  { %v889_v11 = vmul.f32 %v884_v0, %v2351_v52  ;;  %v890_v17 = vmul.f32 %v884_v0, %v2355_v55  ;;  %v891_v19 = vmul.f32 %v884_v0, %v2360_v7  ;;  %v892_v8 = vmul.f32 %v884_v0, %v2363_v10 }
 0x2f4   :  { %v906_v5 = vrot.slane %v879_v2, %v2313_v62  ;;  %v893_v52 = vmul.f32 %v884_v0, %v2366_v18  ;;  %v894_v7 = vmul.f32 %v884_v0, %v2370_v16  ;;  %v895_v33 = vmul.f32 %v884_v0, %v2375_v30  ;;  %v1766_v60 = vpop.f32.mrf.mxu1 }
 0x2f5   :  { %v896_v18 = vmul.f32 %v884_v0, %v2377_v20  ;;  %v897_v28 = vmul.f32 %v884_v0, %v2380_v21  ;;  %v899_v16 = vmul.f32 %v884_v0, %v2389_v38  ;;  %v898_v30 = vmul.f32 %v884_v0, %v2384_v22 }
 0x2f6   :  { %v908_v23 = vadd.f32 %v906_v5, %v886_v4  ;;  %v909_v25 = vadd.f32 %v906_v5, %v887_v24  ;;  %v910_v42 = vadd.f32 %v906_v5, %v888_v15  ;;  %v911_v26 = vadd.f32 %v906_v5, %v889_v11  ;;  %v1066_v2 = vpop.f32.mrf.mxu1 }
 0x2f7   :  { %v912_v29 = vadd.f32 %v906_v5, %v890_v17  ;;  %v913_v14 = vadd.f32 %v906_v5, %v891_v19  ;;  %v914_v34 = vadd.f32 %v906_v5, %v892_v8  ;;  %v915_v6 = vadd.f32 %v906_v5, %v893_v52  ;;  %v2456_v8 = vld [vmem:[%s2498_s11] ss:$0 sm:$0xff]  ;;  %s2088_s11 = smov [#allocation14]  }
 0x2f8   :  { %v924_v9 = vmax.f32 %v908_v23, 0.0  ;;  %v925_v48 = vmax.f32 %v909_v25, 0.0  ;;  %v926_v13 = vmax.f32 %v910_v42, 0.0  ;;  %v927_v62 = vmax.f32 %v911_v26, 0.0  ;;  %v1769_v4 = vpop.f32.mrf.mxu1  ;;  %s1491_s23 = sshll.u32 %s2088_s11, 4  ;;  %s1492_s23 = int_to_ptr.vmem [resolvable:$true] %s1491_s23 }
 0x2f9   :  { %v928_v32 = vmax.f32 %v912_v29, 0.0  ;;  %v929_v1 = vmax.f32 %v913_v14, 0.0  ;;  %v916_v36 = vadd.f32 %v906_v5, %v894_v7  ;;  %v917_v57 = vadd.f32 %v906_v5, %v895_v33  ;;  %s2047_s26 = scalar_lea.vmem %s1492_s23, 2048  ;;  %p2052_p8 = scmp.lt.s32.totalorder %s1492_s23, %s1492_s23 }
 0x2fa   :  { %v940_v37 = vpack.c.bf16 %v925_v48, %v924_v9  ;;  %v941_v55 = vpack.c.bf16 %v927_v62, %v926_v13  ;;  %v930_v27 = vmax.f32 %v914_v34, 0.0  ;;  %v931_v40 = vmax.f32 %v915_v6, 0.0  ;;  %v1079_v24 = vpop.f32.mrf.mxu1  ;;  %p2048_p7 = scmp.ne.s32.totalorder %s1492_s23, %s2047_s26  ;;  %p2053_p9 = scmp.lt.s32.totalorder %s2047_s26, %s2047_s26 }
 0x2fb   :  { %v942_v35 = vpack.c.bf16 %v929_v1, %v928_v32  ;;  %v932_v56 = vmax.f32 %v916_v36, 0.0  ;;  %v933_v10 = vmax.f32 %v917_v57, 0.0  ;;  %v918_v41 = vadd.f32 %v906_v5, %v896_v18 }
 0x2fc   :  { %1795 = vmatprep.mubr.bf16.mxu0 %v940_v37  ;;  %v943_v58 = vpack.c.bf16 %v931_v40, %v930_v27  ;;  %v919_v63 = vadd.f32 %v906_v5, %v897_v28  ;;  %v920_v43 = vadd.f32 %v906_v5, %v898_v30  ;;  %v921_v44 = vadd.f32 %v906_v5, %v899_v16  ;;  %v1770_v15 = vpop.f32.mrf.mxu1  ;;  %p2054_p10 = por %p2053_p9, %p2052_p8 }
 0x2fd   :  { %1796 = vmatmul.mubr.bf16.vlgmr.msra.gmra.mxu0 %v941_v55  ;;  %v944_v3 = vpack.c.bf16 %v933_v10, %v932_v56  ;;  %v934_v45 = vmax.f32 %v918_v41, 0.0  ;;  %v900_v20 = vmul.f32 %v884_v0, %v2391_v39  ;;  %v901_v21 = vmul.f32 %v884_v0, %v2394_v59 }
 0x2fe   :  { %1799 = vmatprep.mubr.bf16.mxu0 %v942_v35  ;;  %v935_v46 = vmax.f32 %v919_v63, 0.0  ;;  %v936_v47 = vmax.f32 %v920_v43, 0.0  ;;  %v937_v61 = vmax.f32 %v921_v44, 0.0  ;;  %v1082_v39 = vpop.f32.mrf.mxu1  ;;  %p2055_p11 = pnand %p2054_p10, %p2048_p7 }
 0x2ff   :  { %v922_v38 = vadd.f32 %v906_v5, %v900_v20  ;;  %v923_v49 = vadd.f32 %v906_v5, %v901_v21 }
 0x300   :  { %v945_v31 = vpack.c.bf16 %v935_v46, %v934_v45  ;;  %v946_v22 = vpack.c.bf16 %v937_v61, %v936_v47  ;;  %v1773_v11 = vpop.f32.mrf.mxu1 }
 0x301   :  { %v938_v12 = vmax.f32 %v922_v38, 0.0  ;;  %v939_v50 = vmax.f32 %v923_v49, 0.0 }
 0x302   :  { %v2439_v59 = vpop.f32.mrf.mxu1 }
 0x303   :  { %v947_v51 = vpack.c.bf16 %v939_v50, %v938_v12 }
 0x304   :  { %v2441_v0 = vpop.f32.mrf.mxu1 }
 0x305   :  { %1800 = vmatmul.mubr.bf16.gmra.mxu0 %v943_v58 }
 0x306   :  { %1803 = vmatprep.mubr.bf16.mxu0 %v944_v3  ;;  %v2443_v5 = vpop.f32.mrf.mxu1 }
 0x308   :  { %v2445_v17 = vpop.f32.mrf.mxu1 }
 0x30a   :  { %v2447_v19 = vpop.f32.mrf.mxu1 }
 0x30c   :  { %v2449_v23 = vpop.f32.mrf.mxu1 }
 0x30d   :  { %1804 = vmatmul.mubr.bf16.gmra.mxu0 %v945_v31 }
 0x30e   :  { %1807 = vmatprep.mubr.bf16.mxu0 %v946_v22  ;;  %v2451_v25 = vpop.f32.mrf.mxu1 }
 0x310   :  { %v1829_v42 = vpop.f32.mrf.mxu1 }
 0x312   :  { %v1369_v26 = vpop.f32.mrf.mxu1 }
 0x314   :  { %v1830_v29 = vpop.f32.mrf.mxu1 }
 0x315   :  { %1808 = vmatmul.mubr.bf16.gmra.mxu0 %v947_v51 }
 0x316   :  { %v1372_v14 = vpop.f32.mrf.mxu1 }
 0x318   :  { %v1833_v9 = vpop.f32.mrf.mxu1 }
 0x31a   :  { %v1385_v48 = vpop.f32.mrf.mxu1 }
 0x31c   :  { %v1834_v13 = vpop.f32.mrf.mxu1 }
 0x31e   :  { %v1388_v32 = vpop.f32.mrf.mxu1 }
 0x320   :  { %v1837_v33 = vpop.f32.mrf.mxu1 }
 0x322   :  { %v1401_v10 = vpop.f32.mrf.mxu1 }
 0x324   :  { %v1838_v43 = vpop.f32.mrf.mxu1 }
 0x326   :  { %v1404_v38 = vpop.f32.mrf.mxu1 }
 0x3bd   :  { %v1797_v62 = vpop.f32.mrf.mxu0 }
 0x3be   :  { %v1217_v1 = vadd.f32 %v1797_v62, %v1765_v53 }
 0x3bf   :  { %v1208_v52 = vpop.f32.mrf.mxu0 }
 0x3c0   :  { %v1434_v37 = vadd.f32 %v1829_v42, %v1217_v1  ;;  %v1209_v55 = vadd.f32 %v1208_v52, %v1063_v54 }
 0x3c1   :  { %v1798_v7 = vpop.f32.mrf.mxu0 }
 0x3c2   :  { %v1456_v34 = vadd.f32 %v2456_v8, %v1434_v37  ;;  %v1432_v6 = vadd.f32 %v1369_v26, %v1209_v55  ;;  %v1220_v35 = vadd.f32 %v1798_v7, %v1766_v60 }
 0x3c3   :  { %v1211_v36 = vpop.f32.mrf.mxu0 }
 0x3c4   :  { %1472 = vst [vmem:[#allocation14 + $0x10] sm:$0xff] %v1456_v34  ;;  %v1454_v57 = vadd.f32 %v2456_v8, %v1432_v6  ;;  %v1435_v27 = vadd.f32 %v1830_v29, %v1220_v35  ;;  %v1212_v40 = vadd.f32 %v1211_v36, %v1066_v2  ;;  %v1841_v2 = vpop.f32.mrf.mxu1 }
 0x3c5   :  { %v1801_v56 = vpop.f32.mrf.mxu0 }
 0x3c6   :  { %1470 = vst [vmem:[#allocation14] sm:$0xff] %v1454_v57  ;;  %v1457_v18 = vadd.f32 %v2456_v8, %v1435_v27  ;;  %v1433_v28 = vadd.f32 %v1372_v14, %v1212_v40  ;;  %v1233_v16 = vadd.f32 %v1801_v56, %v1769_v4  ;;  %v1417_v29 = vpop.f32.mrf.mxu1 }
 0x3c7   :  { %v1224_v30 = vpop.f32.mrf.mxu0 }
 0x3c8   :  { %1473 = vst [vmem:[#allocation14 + $0x18] sm:$0xff] %v1457_v18  ;;  %v1455_v58 = vadd.f32 %v2456_v8, %v1433_v28  ;;  %v1438_v41 = vadd.f32 %v1833_v9, %v1233_v16  ;;  %v1225_v63 = vadd.f32 %v1224_v30, %v1079_v24  ;;  %v1842_v1 = vpop.f32.mrf.mxu1 }
 0x3c9   :  { %v1802_v3 = vpop.f32.mrf.mxu0 }
 0x3ca   :  { %1471 = vst [vmem:[#allocation14 + $0x8] sm:$0xff] %v1455_v58  ;;  %v1460_v44 = vadd.f32 %v2456_v8, %v1438_v41  ;;  %v1436_v45 = vadd.f32 %v1385_v48, %v1225_v63  ;;  %v1236_v46 = vadd.f32 %v1802_v3, %v1770_v15  ;;  %v1420_v6 = vpop.f32.mrf.mxu1 }
 0x3cb   :  { %v1227_v47 = vpop.f32.mrf.mxu0 }
 0x3cc   :  { %1476 = vst [vmem:[#allocation14 + $0x30] sm:$0xff] %v1460_v44  ;;  %v1458_v61 = vadd.f32 %v2456_v8, %v1436_v45  ;;  %v1439_v20 = vadd.f32 %v1834_v13, %v1236_v46  ;;  %v1228_v21 = vadd.f32 %v1227_v47, %v1082_v39 }
 0x3cd   :  { %v1805_v31 = vpop.f32.mrf.mxu0 }
 0x3ce   :  { %1474 = vst [vmem:[#allocation14 + $0x20] sm:$0xff] %v1458_v61  ;;  %v1461_v49 = vadd.f32 %v2456_v8, %v1439_v20  ;;  %v1437_v22 = vadd.f32 %v1388_v32, %v1228_v21  ;;  %v1249_v12 = vadd.f32 %v1805_v31, %v1773_v11 }
 0x3cf   :  { %v1240_v50 = vpop.f32.mrf.mxu0 }
 0x3d0   :  { %1477 = vst [vmem:[#allocation14 + $0x38] sm:$0xff] %v1461_v49  ;;  %v1459_v51 = vadd.f32 %v2456_v8, %v1437_v22  ;;  %v1442_v53 = vadd.f32 %v1837_v33, %v1249_v12  ;;  %v1241_v54 = vadd.f32 %v1240_v50, %v2439_v59 }
 0x3d1   :  { %v1806_v60 = vpop.f32.mrf.mxu0 }
 0x3d2   :  { %1475 = vst [vmem:[#allocation14 + $0x28] sm:$0xff] %v1459_v51  ;;  %v1464_v4 = vadd.f32 %v2456_v8, %v1442_v53  ;;  %v1440_v24 = vadd.f32 %v1401_v10, %v1241_v54  ;;  %v1252_v15 = vadd.f32 %v1806_v60, %v2441_v0 }
 0x3d3   :  { %v1243_v39 = vpop.f32.mrf.mxu0 }
 0x3d4   :  { %1480 = vst [vmem:[#allocation14 + $0x50] sm:$0xff] %v1464_v4  ;;  %v1462_v42 = vadd.f32 %v2456_v8, %v1440_v24  ;;  %v1443_v11 = vadd.f32 %v1838_v43, %v1252_v15  ;;  %v1244_v26 = vadd.f32 %v1243_v39, %v2443_v5 }
 0x3d5   :  { %v1809_v14 = vpop.f32.mrf.mxu0 }
 0x3d6   :  { %1478 = vst [vmem:[#allocation14 + $0x40] sm:$0xff] %v1462_v42  ;;  %v1465_v59 = vadd.f32 %v2456_v8, %v1443_v11  ;;  %v1441_v9 = vadd.f32 %v1404_v38, %v1244_v26  ;;  %v1265_v48 = vadd.f32 %v1809_v14, %v2445_v17 }
 0x3d7   :  { %v1256_v13 = vpop.f32.mrf.mxu0 }
 0x3d8   :  { %1481 = vst [vmem:[#allocation14 + $0x58] sm:$0xff] %v1465_v59  ;;  %v1463_v62 = vadd.f32 %v2456_v8, %v1441_v9  ;;  %v1446_v0 = vadd.f32 %v1841_v2, %v1265_v48  ;;  %v1257_v32 = vadd.f32 %v1256_v13, %v2447_v19 }
 0x3d9   :  { %v1810_v52 = vpop.f32.mrf.mxu0 }
 0x3da   :  { %1479 = vst [vmem:[#allocation14 + $0x48] sm:$0xff] %v1463_v62  ;;  %v1468_v5 = vadd.f32 %v2456_v8, %v1446_v0  ;;  %v1444_v37 = vadd.f32 %v1417_v29, %v1257_v32  ;;  %v1268_v55 = vadd.f32 %v1810_v52, %v2449_v23 }
 0x3db   :  { %v1259_v7 = vpop.f32.mrf.mxu0 }
 0x3dc   :  { %1484 = vst [vmem:[#allocation14 + $0x70] sm:$0xff] %v1468_v5  ;;  %v1466_v33 = vadd.f32 %v2456_v8, %v1444_v37  ;;  %v1447_v17 = vadd.f32 %v1842_v1, %v1268_v55  ;;  %v1260_v34 = vadd.f32 %v1259_v7, %v2451_v25 }
 0x3de   :  { %1482 = vst [vmem:[#allocation14 + $0x60] sm:$0xff] %v1466_v33  ;;  %v1469_v19 = vadd.f32 %v2456_v8, %v1447_v17  ;;  %v1445_v35 = vadd.f32 %v1420_v6, %v1260_v34 }
 0x3e0   :  { %1485 = vst [vmem:[#allocation14 + $0x78] sm:$0xff] %v1469_v19  ;;  %v1467_v36 = vadd.f32 %v2456_v8, %v1445_v35 }
 0x3e2   :  { %1483 = vst [vmem:[#allocation14 + $0x68] sm:$0xff] %v1467_v36 }
 0x3e3   :  { %2058 = shalt.err (!%p2055_p11)
}
 0x3e4   :  { %1497 = dma.vmem_to_hbm [thread:$0]  %s1492_s23, 2048, %s2499_s12, [#allocation4], %s2083_s5, %s2083_s5, %s2084_s22  }
 0x3e5   :  { %2075 = dma.done.wait [#allocation4], 2048  }
 0x3e6   :  { %2076 = vsyncadd [#allocation4], 4294965248 }
 0x3e7   :  { %1501 = vsyncpa [#allocation3], 1 }
 0x3e8   :  { %1502 = vsyncpa [#allocation6], 1 }
 0x3e9   :  { %1503 = vsyncpa [#allocation9], 1 }
 0x3ea   :  { %1504 = vsyncpa [#allocation12], 1 }
 0x3eb   :  { %1505 = vsyncpa [#allocation4], 1 }

</bundles_post_ra>
